<compile_context>
chip_gen: v7x
topology: tpu7x:2x2x1
jax: 0.10.0
libtpu: 0.0.40
codegen_flags: <defaults>
</compile_context>

<pallas_src>
import jax
import jax.numpy as jnp
from jax import lax
from jax.experimental import pallas as pl
from jax.experimental.pallas import tpu as pltpu
import numpy as np


# ---------------------------------------------------------------------------
# Tunables / gates
# ---------------------------------------------------------------------------
_VMEM_TABLE_BUDGET = 4 * 1024 * 1024   # max f32 table bytes kept resident in VMEM
_ONEHOT_MAX_VOCAB = 512                # one-hot MXU gather only below the HBM roofline
_MAX_TILE_TOKENS = 1024                # bounded token tile (keeps onehot/seq buffers small)
_MAX_ONEHOT_BYTES = 4 * 1024 * 1024    # cap on the (n_tok, V) bf16 one-hot intermediate


# ---------------------------------------------------------------------------
# Kernels
# ---------------------------------------------------------------------------
def _pool_and_store(seq_f32, seq_ref, pool_ref):
    """Store the gathered sequence tile and its per-sample mean."""
    seq_ref[...] = seq_f32.astype(seq_ref.dtype)        # one dense lane/sublane-full store
    bt, d = pool_ref.shape
    s = seq_f32.shape[0] // bt
    # Mean pool = cross-sublane sum (XLU) on the in-vreg f32 result; no second MXU matmul.
    pooled = jnp.sum(seq_f32.reshape(bt, s, d), axis=1) * jnp.float32(1.0 / s)
    pool_ref[...] = pooled.astype(pool_ref.dtype)


def _onehot_gather_kernel(ids_ref, emb_hi_ref, emb_lo_ref, seq_ref, pool_ref):
    """Small-vocab path: gather = one-hot(bf16) @ [hi|lo] bf16 planes of the f32 table.

    ids_ref     : VMEM (n_tok, 1) int32  -- flattened token ids for this batch tile
    emb_*_ref   : VMEM (V, D) bf16       -- hi/lo planes of the f32 table (grid-invariant)
    seq_ref     : VMEM (n_tok, D)        -- flattened sequence-output tile
    pool_ref    : VMEM (bt, D)           -- mean-pooled output tile
    """
    v = emb_hi_ref.shape[0]
    ids = ids_ref[...]                                       # (n_tok, 1) int32
    vocab = lax.broadcasted_iota(jnp.int32, (1, v), 1)       # (1, V) -- no (n_tok, V) iota
    onehot = (ids == vocab).astype(jnp.bfloat16)             # (n_tok, V) bf16, exact 0/1
    # Two native 1-pass bf16 MXU matmuls (f32 accumulate) reconstruct the f32 rows to
    # ~2^-17 relative accuracy -- no Precision.HIGHEST multi-pass emulation.
    seq = jnp.dot(onehot, emb_hi_ref[...], preferred_element_type=jnp.float32)
    seq = seq + jnp.dot(onehot, emb_lo_ref[...], preferred_element_type=jnp.float32)
    _pool_and_store(seq, seq_ref, pool_ref)


def _take_gather_kernel(ids_ref, emb_ref, seq_ref, pool_ref):
    """Moderate-vocab path: bit-exact vector row gather from the VMEM-resident f32 table."""
    ids = ids_ref[...][:, 0]                                 # (n_tok,) int32
    seq = jnp.take(emb_ref[...], ids, axis=0).astype(jnp.float32)
    _pool_and_store(seq, seq_ref, pool_ref)


# ---------------------------------------------------------------------------
# Wrapper
# ---------------------------------------------------------------------------
def _pick_batch_tile(batch, seq_len, vocab):
    """Samples per grid step: sublane-legal, bounded token tile, >= 2 grid steps if possible."""
    def legal(bt):
        # pooled tile (bt, D) and seq/ids tiles (bt*S, *) must be full-array or 8-aligned rows
        return bt == batch or bt % 8 == 0

    def fits(bt):
        n_tok = bt * seq_len
        return n_tok <= _MAX_TILE_TOKENS and n_tok * vocab * 2 <= _MAX_ONEHOT_BYTES

    cands = [bt for bt in range(1, batch + 1) if batch % bt == 0 and legal(bt)]
    fitting = [bt for bt in cands if fits(bt)]
    if fitting:
        sub_batch = [bt for bt in fitting if bt < batch]   # prefer >= 2 grid steps (pipelining,
        return max(sub_batch) if sub_batch else max(fitting)  # v7x dual-TC sharding)
    return min(cands)   # nothing meets the budget: smallest legal tile


def word_embedding_lm_forward(input_ids, embeddings, *, batch_norm=False,
                              batch_tile=None, seq_output_dtype=None):
    """Pallas implementation of WordEmbedding_LM.forward (batch_norm=False path).

    input_ids : (B, S) integer token ids, all assumed in [0, V)
    embeddings: (V, D) float32 embedding table
    returns   : sequence_output (B, S, D), pooled_output (B, D)
    """
    if batch_norm:
        # TODO(synk): batch_norm=True branch (nn.BatchNorm1d on pooled_output) not implemented.
        raise NotImplementedError("batch_norm=True is not implemented in the Pallas kernel")

    batch, seq_len = input_ids.shape
    vocab, dim = embeddings.shape
    out_dtype = embeddings.dtype if seq_output_dtype is None else jnp.dtype(seq_output_dtype)

    table_bytes = int(vocab) * int(dim) * jnp.dtype(embeddings.dtype).itemsize
    if table_bytes > _VMEM_TABLE_BUDGET:
        # TODO(synk): large-vocab path (table in HBM, per-row gather via scalar-prefetch
        # pl.Element BlockSpec or manual double-buffered make_async_copy) not implemented.
        raise NotImplementedError("Embedding table too large for the VMEM-resident kernel")

    bt = _pick_batch_tile(batch, seq_len, vocab) if batch_tile is None else int(batch_tile)
    assert batch % bt == 0, "batch_tile must divide the batch size"
    assert bt == batch or bt % 8 == 0, "batch_tile must be the full batch or a multiple of 8"
    n_tok = bt * seq_len

    ids_flat = input_ids.reshape(batch * seq_len, 1).astype(jnp.int32)
    grid = (batch // bt,)

    use_onehot = vocab <= _ONEHOT_MAX_VOCAB
    if use_onehot:
        # Split the f32 table once (outside the kernel) into bf16 hi/lo planes.
        emb_hi = embeddings.astype(jnp.bfloat16)
        emb_lo = (embeddings - emb_hi.astype(embeddings.dtype)).astype(jnp.bfloat16)
        table_inputs = (emb_hi, emb_lo)
        kernel = _onehot_gather_kernel
        onehot_vmem = n_tok * vocab * 2
    else:
        table_inputs = (embeddings,)
        kernel = _take_gather_kernel
        onehot_vmem = 0

    # Grid-invariant table operands (index map is constant, so no re-DMA across grid steps).
    table_specs = [pl.BlockSpec((vocab, dim), lambda i: (0, 0)) for _ in table_inputs]
    table_vmem = 2 * sum(int(np.prod(t.shape)) * t.dtype.itemsize for t in table_inputs)

    grid_spec = pltpu.PrefetchScalarGridSpec(
        num_scalar_prefetch=0,
        grid=grid,
        in_specs=[pl.BlockSpec((n_tok, 1), lambda i: (i, 0))] + table_specs,
        out_specs=[
            pl.BlockSpec((n_tok, dim), lambda i: (i, 0)),   # flattened sequence-output tile
            pl.BlockSpec((bt, dim), lambda i: (i, 0)),      # pooled-output tile
        ],
    )

    # Explicit VMEM budget (review: re-derive for v7x's 64 MiB / v5e's 16 MiB scoped default):
    # ids tiles + (double-buffered) invariant tables + output tiles + in-kernel intermediates.
    est_vmem = (
        2 * n_tok * 128 * 4                                   # (n_tok, 1) ids, lane-padded, x2
        + table_vmem                                          # table(s), x2 pipeline buffers
        + 2 * n_tok * dim * jnp.dtype(out_dtype).itemsize     # sequence tile, x2
        + 2 * max(bt, 8) * dim * 4                            # pooled tile, x2
        + onehot_vmem + n_tok * dim * 4                       # one-hot + f32 seq intermediates
    )
    vmem_limit = int(min(48 * 1024 * 1024, max(32 * 1024 * 1024, 2 * est_vmem)))

    seq_flat, pooled = pl.pallas_call(
        kernel,
        grid_spec=grid_spec,
        out_shape=(
            jax.ShapeDtypeStruct((batch * seq_len, dim), out_dtype),
            jax.ShapeDtypeStruct((batch, dim), embeddings.dtype),
        ),
        compiler_params=pltpu.CompilerParams(
            dimension_semantics=("parallel",),   # batch tiles are independent (v7x dual-TC)
            vmem_limit_bytes=vmem_limit,
        ),
    )(ids_flat, *table_inputs)

    return seq_flat.reshape(batch, seq_len, dim), pooled


if __name__ == "__main__":
    key = jax.random.PRNGKey(0)
    k_emb, k_ids = jax.random.split(key)

    B, S = 2, 8          # batch, sequence length
    V, D = 64, 128       # vocab size, embedding dim

    # Deterministic synthetic "checkpoint": embedding table + token ids.
    embeddings = jax.random.normal(k_emb, (V, D), dtype=jnp.float32)
    input_ids = jax.random.randint(k_ids, (B, S), 0, V, dtype=jnp.int32)

    seq_out, pooled_out = word_embedding_lm_forward(input_ids, embeddings)
    jax.block_until_ready((seq_out, pooled_out))

    # Pure-JAX reference.
    ref_seq = embeddings[input_ids]                   # (B, S, D)
    ref_pooled = jnp.mean(ref_seq, axis=1)            # (B, D)

    assert seq_out.shape == (B, S, D) and seq_out.dtype == jnp.float32
    assert pooled_out.shape == (B, D) and pooled_out.dtype == jnp.float32
    # bf16 hi/lo gather reconstructs the f32 rows to ~2^-17 relative accuracy.
    np.testing.assert_allclose(np.asarray(seq_out), np.asarray(ref_seq), rtol=1e-5, atol=2e-5)
    np.testing.assert_allclose(np.asarray(pooled_out), np.asarray(ref_pooled), rtol=1e-5, atol=2e-5)

    print("KERNEL_OK")
</pallas_src>

<mosaic_0001>
module attributes {stable_mosaic.version = 11 : i64} {
  func.func @_onehot_gather_kernel(%arg0: i32, %arg1: memref<16x1xi32, #tpu.memory_space<vmem>>, %arg2: memref<64x128xbf16, #tpu.memory_space<vmem>>, %arg3: memref<64x128xbf16, #tpu.memory_space<vmem>>, %arg4: memref<16x128xf32, #tpu.memory_space<vmem>>, %arg5: memref<2x128xf32, #tpu.memory_space<vmem>>) attributes {dimension_semantics = [#tpu.dimension_semantics<parallel>], iteration_bounds = array<i64: 1>, scalar_prefetch = 0 : i64, scratch_operands = 0 : i64, tpu.core_type = #tpu.core_type<tc>, window_params = [{transform_indices = @transform_0, window_bounds = array<i64: 16, 1>}, {pipeline_mode = #tpu.pipeline_mode<synchronous>, transform_indices = @transform_1, window_bounds = array<i64: 64, 128>}, {pipeline_mode = #tpu.pipeline_mode<synchronous>, transform_indices = @transform_2, window_bounds = array<i64: 64, 128>}, {transform_indices = @transform_3, window_bounds = array<i64: 16, 128>}, {transform_indices = @transform_4, window_bounds = array<i64: 2, 128>}]} {
    %c0 = arith.constant 0 : index
    %c0_0 = arith.constant 0 : index
    %0 = vector.load %arg1[%c0, %c0_0] : memref<16x1xi32, #tpu.memory_space<vmem>>, vector<16x1xi32>
    %1 = tpu.iota {dimensions = array<i32: 1>} : vector<1x64xi32>
    %2 = vector.broadcast %0 : vector<16x1xi32> to vector<16x64xi32>
    %3 = vector.broadcast %1 : vector<1x64xi32> to vector<16x64xi32>
    %4 = arith.cmpi eq, %2, %3 : vector<16x64xi32>
    %5 = arith.extui %4 : vector<16x64xi1> to vector<16x64xi32>
    %6 = arith.sitofp %5 : vector<16x64xi32> to vector<16x64xf32>
    %7 = arith.truncf %6 : vector<16x64xf32> to vector<16x64xbf16>
    %c0_1 = arith.constant 0 : index
    %c0_2 = arith.constant 0 : index
    %8 = vector.load %arg2[%c0_1, %c0_2] : memref<64x128xbf16, #tpu.memory_space<vmem>>, vector<64x128xbf16>
    %cst = arith.constant dense<0.000000e+00> : vector<16x128xf32>
    %9 = tpu.matmul %7, %8, %cst {dimension_numbers = #tpu.dot_dimension_numbers<[1], [0], [0], [1], [0, 0, 1, 1], [], []>} : vector<16x64xbf16>, vector<64x128xbf16>, vector<16x128xf32> -> vector<16x128xf32>
    %c0_3 = arith.constant 0 : index
    %c0_4 = arith.constant 0 : index
    %10 = vector.load %arg3[%c0_3, %c0_4] : memref<64x128xbf16, #tpu.memory_space<vmem>>, vector<64x128xbf16>
    %cst_5 = arith.constant dense<0.000000e+00> : vector<16x128xf32>
    %11 = tpu.matmul %7, %10, %cst_5 {dimension_numbers = #tpu.dot_dimension_numbers<[1], [0], [0], [1], [0, 0, 1, 1], [], []>} : vector<16x64xbf16>, vector<64x128xbf16>, vector<16x128xf32> -> vector<16x128xf32>
    %12 = arith.addf %9, %11 : vector<16x128xf32>
    %c0_6 = arith.constant 0 : index
    %c0_7 = arith.constant 0 : index
    %13 = vector.load %arg4[%c0_6, %c0_7] : memref<16x128xf32, #tpu.memory_space<vmem>>, vector<16x128xf32>
    tpu.vector_store %arg4[%c0_6, %c0_7], %12 {strides = array<i32>} : memref<16x128xf32, #tpu.memory_space<vmem>>, vector<16x128xf32>,
    %14 = vector.shape_cast %12 : vector<16x128xf32> to vector<2x8x128xf32>
    %cst_8 = arith.constant dense<0.000000e+00> : vector<2x128xf32>
    %15 = vector.multi_reduction <add>, %14, %cst_8 [1] : vector<2x8x128xf32> to vector<2x128xf32>
    %cst_9 = arith.constant 1.250000e-01 : f32
    %16 = vector.broadcast %cst_9 : f32 to vector<2x128xf32>
    %17 = arith.mulf %15, %16 : vector<2x128xf32>
    %c0_10 = arith.constant 0 : index
    %c0_11 = arith.constant 0 : index
    %18 = vector.load %arg5[%c0_10, %c0_11] : memref<2x128xf32, #tpu.memory_space<vmem>>, vector<2x128xf32>
    tpu.vector_store %arg5[%c0_10, %c0_11], %17 {strides = array<i32>} : memref<2x128xf32, #tpu.memory_space<vmem>>, vector<2x128xf32>,
    return
  }
  func.func @transform_0(%arg0: i32) -> (i32, i32) {
    %c0_i32 = arith.constant 0 : i32
    %c0_i32_0 = arith.constant 0 : i32
    return %arg0, %c0_i32 : i32, i32
  }
  func.func @transform_1(%arg0: i32) -> (i32, i32) {
    %c0_i32 = arith.constant 0 : i32
    %c0_i32_0 = arith.constant 0 : i32
    %c0_i32_1 = arith.constant 0 : i32
    return %c0_i32, %c0_i32_0 : i32, i32
  }
  func.func @transform_2(%arg0: i32) -> (i32, i32) {
    %c0_i32 = arith.constant 0 : i32
    %c0_i32_0 = arith.constant 0 : i32
    %c0_i32_1 = arith.constant 0 : i32
    return %c0_i32, %c0_i32_0 : i32, i32
  }
  func.func @transform_3(%arg0: i32) -> (i32, i32) {
    %c0_i32 = arith.constant 0 : i32
    %c0_i32_0 = arith.constant 0 : i32
    return %arg0, %c0_i32 : i32, i32
  }
  func.func @transform_4(%arg0: i32) -> (i32, i32) {
    %c0_i32 = arith.constant 0 : i32
    %c0_i32_0 = arith.constant 0 : i32
    return %arg0, %c0_i32 : i32, i32
  }
}

</mosaic_0001>

<bundles_post_ra>
// kernel: tpu_custom_call.1
= control target key start
LH: loop header
LB: loop body
LE: loop exit
PB: predicated region body
PF: predicated region fallthrough
CT: control target
= control target key end

     0   :  { %10 = vsyncpa [#allocation3], 0  ;;  %s522_s0 = inlined_call_operand.vmem [shape: s32[16,1], index: 0, kind: input, shape index: {}]   ;;  %s523_s1 = inlined_call_operand.hbm [shape: bf16[64,128], index: 1, kind: input, shape index: {}]   ;;  %s524_s2 = inlined_call_operand.hbm [shape: bf16[64,128], index: 2, kind: input, shape index: {}]   ;;  %s525_s3 = inlined_call_operand.hbm [shape: f32[16,128], index: 3, kind: output, shape index: {0}]   ;;  %s526_s4 = inlined_call_operand.hbm [shape: f32[2,128], index: 4, kind: output, shape index: {1}]  }
   0x1   :  { %11 = vsyncpa [#allocation6], 0 }
   0x2   :  { %12 = vsyncpa [#allocation4], 0 }
   0x3   :  { %13 = vsyncpa [#allocation9], 0  ;;  %s432_s15 = smov [#allocation2]   ;;  %s336_s19 = scalar_lea.hbm %s523_s1, 512 }
   0x4   :  { %s21_s16 = sshll.u32 %s432_s15, 4  ;;  %p337_p0 = scmp.ne.s32.totalorder %s523_s1, %s336_s19  ;;  %s22_s16 = int_to_ptr.vmem [resolvable:$true] %s21_s16 }
   0x5   :  { %p340_p1 = scmp.lt.u32.totalorder %s336_s19, %s523_s1 }
   0x7   :  { %p342_p2 = pnand %p340_p1, %p337_p0 }
   0x9   :  { %345 = shalt.err (!%p342_p2)
}
   0xa   :  { %s346_s24 = scalar_lea.vmem %s22_s16, 512  ;;  %p351_p4 = scmp.lt.s32.totalorder %s22_s16, %s22_s16 }
   0xb   :  { %p347_p3 = scmp.ne.s32.totalorder %s22_s16, %s346_s24  ;;  %p352_p5 = scmp.lt.s32.totalorder %s346_s24, %s346_s24 }
   0xd   :  { %p353_p6 = por %p352_p5, %p351_p4 }
   0xf   :  { %p354_p7 = pnand %p353_p6, %p347_p3 }
  0x11   :  { %357 = shalt.err (!%p354_p7)
}
  0x12   :  { %s433_s25 = smov 64   ;;  %s434_s26 = smov 4  }
  0x13   :  { %27 = dma.hbm_to_vmem [thread:$0]  %s523_s1, 512, %s22_s16, [#allocation3], %s433_s25, %s433_s25, %s434_s26  }
  0x14   :  { %s435_s29 = smov [#allocation5]   ;;  %s358_s7 = scalar_lea.hbm %s524_s2, 512 }
  0x15   :  { %s33_s30 = sshll.u32 %s435_s29, 4  ;;  %p359_p8 = scmp.ne.s32.totalorder %s524_s2, %s358_s7  ;;  %s34_s30 = int_to_ptr.vmem [resolvable:$true] %s33_s30 }
  0x16   :  { %p362_p9 = scmp.lt.u32.totalorder %s358_s7, %s524_s2 }
  0x18   :  { %p364_p10 = pnand %p362_p9, %p359_p8 }
  0x1a   :  { %367 = shalt.err (!%p364_p10)
}
  0x1b   :  { %s368_s12 = scalar_lea.vmem %s34_s30, 512  ;;  %p373_p12 = scmp.lt.s32.totalorder %s34_s30, %s34_s30 }
  0x1c   :  { %p369_p11 = scmp.ne.s32.totalorder %s34_s30, %s368_s12  ;;  %p374_p13 = scmp.lt.s32.totalorder %s368_s12, %s368_s12 }
  0x1e   :  { %p375_p0 = por %p374_p13, %p373_p12 }
  0x20   :  { %p376_p1 = pnand %p375_p0, %p369_p11 }
  0x22   :  { %379 = shalt.err (!%p376_p1)
}
  0x23   :  { %39 = dma.hbm_to_vmem [thread:$0]  %s524_s2, 512, %s34_s30, [#allocation6], %s433_s25, %s433_s25, %s434_s26  }
  0x24   :  { %424 = dma.done.wait [#allocation3], 512  }
  0x25   :  { %425 = vsyncadd [#allocation3], 4294966784 }
  0x26   :  { %426 = dma.done.wait [#allocation6], 512  }
  0x27   :  { %427 = vsyncadd [#allocation6], 4294966784  ;;  %v436_v0 = vmov 0   ;;  %v437_v1 = vmov 0.0   ;;  %v47_v2 = vld [vmem:[%s522_s0] sm:$0xff]  ;;  %v48_v3 = vld [vmem:[%s522_s0 + $0x8] sm:$0xff]  ;;  %v49_v12 = vlaneseq }
  0x28   :  { %327 = vset.pattern.permute.xlu0 %v436_v0  ;;  %290 = vmatprep.subr.bf16.mxu1 %v437_v1  ;;  %v328_v4 = vld [vmem:[#allocation5] sm:$0xff]   ;;  %v330_v6 = vld [vmem:[#allocation5 + $0x8] sm:$0xff]   ;;  %v332_v8 = vld [vmem:[#allocation5 + $0x10] sm:$0xff]   ;;  %vm438_vm0 = vmmov 0   ;;  %vm104_vm3 = vcmask 523264   ;;  %s439_s0 = smov [#allocation7]  }
  0x29   :  { %302 = vmatprep.subr.bf16.mxu0 %v437_v1  ;;  %52 = vperm.xlu0 %327, %v47_v2   ;;  %v329_v5 = vld [vmem:[#allocation2] sm:$0xff]   ;;  %v331_v7 = vld [vmem:[#allocation2 + $0x8] sm:$0xff]   ;;  %v333_v9 = vld [vmem:[#allocation2 + $0x10] sm:$0xff]   ;;  %v50_v13 = vand.u32 127, %v49_v12  ;;  %s241_s2 = sshll.u32 %s439_s0, 4  ;;  %s242_s2 = int_to_ptr.vmem [resolvable:$true] %s241_s2 }
  0x2a   :  { %291 = vmatpush3.bf16.msra.mxu1 %v328_v4  ;;  %303 = vmatpush3.bf16.msra.mxu0 %v329_v5  ;;  %v334_v10 = vld [vmem:[#allocation5 + $0x18] sm:$0xff]   ;;  %s380_s18 = scalar_lea.vmem %s242_s2, 256  ;;  %p385_p3 = scmp.lt.s32.totalorder %s242_s2, %s242_s2 }
  0x2b   :  { %292 = vmatprep.subr.bf16.mxu1 %v437_v1  ;;  %304 = vmatprep.subr.bf16.mxu0 %v437_v1  ;;  %v335_v11 = vld [vmem:[#allocation2 + $0x18] sm:$0xff]   ;;  %p381_p2 = scmp.ne.s32.totalorder %s242_s2, %s380_s18  ;;  %p386_p4 = scmp.lt.s32.totalorder %s380_s18, %s380_s18 }
  0x2c   :  { %298 = vmatprep.mubr.msk.bf16.mxu1 %vm438_vm0, %v437_v1  ;;  %310 = vmatprep.mubr.msk.bf16.mxu0 %vm438_vm0, %v437_v1 }
  0x2d   :  { %55 = vperm.xlu0 %327, %v48_v3   ;;  %p387_p5 = por %p386_p4, %p385_p3 }
  0x2e   :  { %293 = vmatpush3.bf16.msra.mxu1 %v330_v6  ;;  %305 = vmatpush3.bf16.msra.mxu0 %v331_v7 }
  0x2f   :  { %294 = vmatprep.subr.bf16.mxu1 %v437_v1  ;;  %306 = vmatprep.subr.bf16.mxu0 %v437_v1  ;;  %p388_p6 = pnand %p387_p5, %p381_p2 }
  0x32   :  { %295 = vmatpush3.bf16.msra.mxu1 %v332_v8  ;;  %307 = vmatpush3.bf16.msra.mxu0 %v333_v9 }
  0x33   :  { %296 = vmatprep.subr.bf16.mxu1 %v437_v1  ;;  %308 = vmatprep.subr.bf16.mxu0 %v437_v1 }
  0x36   :  { %297 = vmatpush3.bf16.msra.mxu1 %v334_v10  ;;  %309 = vmatpush3.bf16.msra.mxu0 %v335_v11 }
  0xa8   :  { %v53_v14 = vpop.permute.xlu0 %52 }
  0xa9   :  { %vm57_vm1 = vcmp.eq.s32.totalorder %v53_v14, %v50_v13 }
  0xaa   :  { %v268_v16 = vsel %vm57_vm1, 1.0, %v437_v1 }
  0xac   :  { %v56_v15 = vpop.permute.xlu0 %55 }
  0xad   :  { %vm58_vm2 = vcmp.eq.s32.totalorder %v56_v15, %v50_v13 }
  0xae   :  { %v269_v17 = vsel %vm58_vm2, 1.0, %v437_v1 }
  0xaf   :  { %v63_v18 = vpack.c.bf16 %v269_v17, %v268_v16 }
  0xb1   :  { %299 = vmatmul.mubr.msk.bf16.vlgmr.msra.gmra.mrb[0].mxu1 %vm104_vm3, %v63_v18  ;;  %311 = vmatmul.mubr.msk.bf16.vlgmr.msra.gmra.mrb[0].mxu0 %vm104_vm3, %v63_v18 }
 0x184   :  { %v142_v19 = vpop.f32.mrb[0].mxu1  ;;  %v207_v20 = vpop.f32.mrb[0].mxu0 }
 0x185   :  { %v208_v21 = vadd.f32 %v207_v20, %v142_v19  ;;  %v300_v22 = vpop.f32.mrb[1].mxu1  ;;  %v312_v23 = vpop.f32.mrb[1].mxu0 }
 0x186   :  { %v145_v24 = vpop.f32.mrb[2].mxu1  ;;  %v210_v25 = vpop.f32.mrb[2].mxu0 }
 0x187   :  { %214 = vst [vmem:[#allocation7] sm:$0xff] %v208_v21  ;;  %v216_v26 = vrot.slane %v208_v21, 4  ;;  %v211_v27 = vadd.f32 %v210_v25, %v145_v24  ;;  %v301_v28 = vpop.f32.mrb[3].mxu1  ;;  %v313_v29 = vpop.f32.mrb[3].mxu0 }
 0x189   :  { %v217_v30 = vadd.f32 %v216_v26, %v208_v21  ;;  %215 = vst [vmem:[#allocation7 + $0x8] sm:$0xff] %v211_v27  ;;  %v222_v31 = vrot.slane %v211_v27, 4 }
 0x18a   :  { %391 = shalt.err (!%p388_p6)
}
 0x18b   :  { %s392_s21 = scalar_lea.hbm %s525_s3, 256 }
 0x18c   :  { %p393_p7 = scmp.ne.s32.totalorder %s525_s3, %s392_s21  ;;  %p396_p8 = scmp.lt.u32.totalorder %s392_s21, %s525_s3 }
 0x18e   :  { %p398_p9 = pnand %p396_p8, %p393_p7 }
 0x190   :  { %401 = shalt.err (!%p398_p9)
}
 0x191   :  { %s440_s26 = smov 128   ;;  %s441_s27 = smov 8   ;;  %v218_v32 = vrot.slane %v217_v30, 2  ;;  %v223_v33 = vadd.f32 %v222_v31, %v211_v27  ;;  %vm232_vm4 = vcmask 1041409  }
 0x192   :  { %247 = dma.vmem_to_hbm [thread:$0]  %s242_s2, 256, %s525_s3, [#allocation4], %s440_s26, %s440_s26, %s441_s27  }
 0x193   :  { %v219_v34 = vadd.f32 %v218_v32, %v217_v30  ;;  %v224_v35 = vrot.slane %v223_v33, 2  ;;  %s442_s30 = smov [#allocation8]  }
 0x194   :  { %s254_s5 = sshll.u32 %s442_s30, 4  ;;  %s255_s5 = int_to_ptr.vmem [resolvable:$true] %s254_s5 }
 0x195   :  { %v220_v36 = vrot.slane %v219_v34, 1  ;;  %v225_v37 = vadd.f32 %v224_v35, %v223_v33  ;;  %s402_s6 = scalar_lea.vmem %s255_s5, 32  ;;  %p407_p11 = scmp.lt.s32.totalorder %s255_s5, %s255_s5 }
 0x196   :  { %p403_p10 = scmp.ne.s32.totalorder %s255_s5, %s402_s6  ;;  %p408_p12 = scmp.lt.s32.totalorder %s402_s6, %s402_s6 }
 0x197   :  { %v226_v38 = vrot.slane %v225_v37, 1  ;;  %v221_v39 = vadd.f32 %v220_v36, %v219_v34 }
 0x198   :  { %p409_p13 = por %p408_p12, %p407_p11 }
 0x199   :  { %v227_v40 = vadd.f32 %v226_v38, %v225_v37  ;;  %v228_v41 = vmul.f32 0.125, %v221_v39 }
 0x19a   :  { %p410_p0 = pnand %p409_p13, %p403_p10 }
 0x19b   :  { %v229_v42 = vmul.f32 0.125, %v227_v40 }
 0x19d   :  { %v233_v43 = vsel %vm232_vm4, %v229_v42, %v228_v41 }
 0x19e   :  { %235 = vst [vmem:[#allocation8] sm:$0x3] %v233_v43 }
 0x19f   :  { %413 = shalt.err (!%p410_p0)
}
 0x1a0   :  { %s414_s8 = scalar_lea.hbm %s526_s4, 32 }
 0x1a1   :  { %p415_p1 = scmp.ne.s32.totalorder %s526_s4, %s414_s8  ;;  %p418_p2 = scmp.lt.u32.totalorder %s414_s8, %s526_s4 }
 0x1a3   :  { %p420_p3 = pnand %p418_p2, %p415_p1 }
 0x1a5   :  { %423 = shalt.err (!%p420_p3)
}
 0x1a6   :  { %257 = dma.vmem_to_hbm [thread:$0]  %s255_s5, 32, %s526_s4, [#allocation9]  }
 0x1a7   :  { %428 = dma.done.wait [#allocation4], 256  }
 0x1a8   :  { %429 = vsyncadd [#allocation4], 4294967040 }
 0x1a9   :  { %430 = dma.done.wait [#allocation9], 32  }
 0x1aa   :  { %431 = vsyncadd [#allocation9], 4294967264 }
 0x1ab   :  { %264 = vsyncpa [#allocation3], 1 }
 0x1ac   :  { %265 = vsyncpa [#allocation6], 1 }
 0x1ad   :  { %266 = vsyncpa [#allocation4], 1 }
 0x1ae   :  { %267 = vsyncpa [#allocation9], 1 }

</bundles_post_ra>
